<compile_context>
chip_gen: v7x
topology: tpu7x:2x2x1
jax: 0.10.0
libtpu: 0.0.40
codegen_flags: <defaults>
</compile_context>

<pallas_src>
import functools

import jax
import jax.numpy as jnp
from jax.experimental import pallas as pl
from jax.experimental.pallas import tpu as pltpu


# ----------------------------------------------------------------------------
# helpers
# ----------------------------------------------------------------------------

def _round_up(x, m):
    return (x + m - 1) // m * m


def _pad_axis(x, target, axis):
    pad = target - x.shape[axis]
    if pad <= 0:
        return x
    widths = [(0, 0)] * x.ndim
    widths[axis] = (0, pad)
    return jnp.pad(x, widths)


def _pick_tile(dim, candidates, align):
    for c in candidates:
        if dim % c == 0:
            return c
    if dim <= candidates[-1]:
        return _round_up(dim, align)
    return candidates[0]


def _row_tile(rows, cols):
    """Row-tile so one f32 block is ~<=1 MiB (pipelines on every TPU generation)."""
    tr = max(8, min(512, ((1 << 20) // (4 * cols)) // 8 * 8))
    return min(tr, _round_up(rows, 8))


# ----------------------------------------------------------------------------
# tiled MXU matmul (bf16 operands, f32 in-place accumulation into the output block)
# ----------------------------------------------------------------------------

def _matmul_kernel(a_ref, b_ref, o_ref):
    @pl.when(pl.program_id(2) == 0)
    def _():
        o_ref[...] = jnp.zeros_like(o_ref)
    o_ref[...] += jnp.dot(a_ref[...], b_ref[...],
                          preferred_element_type=jnp.float32)


def pallas_matmul(a, b):
    """(M, K) @ (K, N) -> f32 (M, N)."""
    M, K = a.shape
    K2, N = b.shape
    assert K == K2
    a = a.astype(jnp.bfloat16)
    b = b.astype(jnp.bfloat16)
    tm = _pick_tile(M, (256, 128), 16)
    tn = _pick_tile(N, (256, 128), 128)
    kp128 = _round_up(K, 128)
    tk = kp128 if kp128 <= 2304 else 512          # single K step for most ResNet shapes
    Mp, Np, Kp = _round_up(M, tm), _round_up(N, tn), _round_up(K, tk)
    a = _pad_axis(_pad_axis(a, Mp, 0), Kp, 1)
    b = _pad_axis(_pad_axis(b, Kp, 0), Np, 1)
    out = pl.pallas_call(
        _matmul_kernel,
        out_shape=jax.ShapeDtypeStruct((Mp, Np), jnp.float32),
        grid_spec=pltpu.PrefetchScalarGridSpec(
            num_scalar_prefetch=0,
            grid=(Mp // tm, Np // tn, Kp // tk),
            in_specs=[pl.BlockSpec((tm, tk), lambda i, j, k: (i, k)),
                      pl.BlockSpec((tk, tn), lambda i, j, k: (k, j))],
            out_specs=pl.BlockSpec((tm, tn), lambda i, j, k: (i, j))),
        compiler_params=pltpu.CompilerParams(
            dimension_semantics=("parallel", "parallel", "arbitrary"),
            vmem_limit_bytes=32 * 1024 * 1024),
    )(a, b)
    if (Mp, Np) != (M, N):
        out = out[:M, :N]
    return out


# ----------------------------------------------------------------------------
# fused stride-1 KxK convolution: tap loop inside the kernel (no im2col in HBM)
# ----------------------------------------------------------------------------

def _conv_tap_kernel(x_ref, w_ref, o_ref, *, kh, kw, ho, wo):
    cin = x_ref.shape[-1]
    tn = o_ref.shape[-1]
    acc = jnp.zeros((ho * wo, tn), jnp.float32)
    for di in range(kh):
        for dj in range(kw):
            patch = x_ref[0, di:di + ho, dj:dj + wo, :].reshape(ho * wo, cin)
            acc = acc + jnp.dot(patch, w_ref[di, dj],
                                preferred_element_type=jnp.float32)
    o_ref[...] = acc.reshape(o_ref.shape)


def pallas_conv_s1(x, w, padding):
    """x: (N,H,W,Cin) bf16, w: (kh,kw,Cin,Cout) bf16, stride 1 -> f32 NHWC."""
    N, H, W, Cin = x.shape
    kh, kw, _, Cout = w.shape
    Ho = H + 2 * padding - kh + 1
    Wo = W + 2 * padding - kw + 1
    xp = jnp.pad(x, ((0, 0), (padding, padding), (padding, padding), (0, 0)))
    Hp, Wp = H + 2 * padding, W + 2 * padding
    tn = Cout if Cout <= 256 else 256
    Cout_p = _round_up(Cout, tn)
    if Cout_p != Cout:
        w = _pad_axis(w, Cout_p, 3)
    kernel = functools.partial(_conv_tap_kernel, kh=kh, kw=kw, ho=Ho, wo=Wo)
    out = pl.pallas_call(
        kernel,
        out_shape=jax.ShapeDtypeStruct((N, Ho, Wo, Cout_p), jnp.float32),
        grid_spec=pltpu.PrefetchScalarGridSpec(
            num_scalar_prefetch=0,
            grid=(N, Cout_p // tn),
            in_specs=[pl.BlockSpec((1, Hp, Wp, Cin), lambda b, j: (b, 0, 0, 0)),
                      pl.BlockSpec((kh, kw, Cin, tn), lambda b, j: (0, 0, 0, j))],
            out_specs=pl.BlockSpec((1, Ho, Wo, tn), lambda b, j: (b, 0, 0, j))),
        compiler_params=pltpu.CompilerParams(
            dimension_semantics=("parallel", "parallel"),
            vmem_limit_bytes=32 * 1024 * 1024),
    )(xp, w)
    if Cout_p != Cout:
        out = out[..., :Cout]
    return out


def conv2d(x, w, stride=1, padding=0):
    """x: NHWC activations; w: (kh,kw,Cin,Cout) bf16 (HWIO). Returns f32 NHWC."""
    N, H, W, Cin = x.shape
    kh, kw, _, Cout = w.shape
    x = x.astype(jnp.bfloat16)
    if kh == 1 and kw == 1:
        if stride > 1:
            x = x[:, ::stride, ::stride, :]
        Ho, Wo = x.shape[1], x.shape[2]
        out = pallas_matmul(x.reshape(N * Ho * Wo, Cin), w.reshape(Cin, Cout))
        return out.reshape(N, Ho, Wo, Cout)
    if stride == 1:
        return pallas_conv_s1(x, w, padding)
    # TODO(synk): the 4 strided KxK convs (7x7 stem + three 3x3/stride-2) still use an
    # im2col matrix; every stride-1 KxK conv avoids it via the fused tap-loop kernel.
    Ho = (H + 2 * padding - kh) // stride + 1
    Wo = (W + 2 * padding - kw) // stride + 1
    xp = jnp.pad(x, ((0, 0), (padding, padding), (padding, padding), (0, 0)))
    cols = []
    for i in range(kh):
        for j in range(kw):
            cols.append(xp[:, i::stride, j::stride, :][:, :Ho, :Wo, :])
    a = jnp.concatenate(cols, axis=-1).reshape(N * Ho * Wo, kh * kw * Cin)
    out = pallas_matmul(a, w.reshape(kh * kw * Cin, Cout))
    return out.reshape(N, Ho, Wo, Cout)


# ----------------------------------------------------------------------------
# BatchNorm: gridded sum/sumsq reduction + fused scale/shift(+residual)(+ReLU) apply
# ----------------------------------------------------------------------------

def _bn_stats_kernel(x_ref, o_ref):
    @pl.when(pl.program_id(0) == 0)
    def _():
        o_ref[...] = jnp.zeros_like(o_ref)
    x = x_ref[...].astype(jnp.float32)
    s = jnp.sum(x, axis=0, keepdims=True)
    ss = jnp.sum(x * x, axis=0, keepdims=True)
    o_ref[...] += jnp.concatenate([s, ss], axis=0)


def pallas_bn_stats(x2d):
    R, C = x2d.shape
    tr = _row_tile(R, C)
    Rp = _round_up(R, tr)
    xp = _pad_axis(x2d, Rp, 0)               # zero rows do not perturb sum / sumsq
    return pl.pallas_call(
        _bn_stats_kernel,
        out_shape=jax.ShapeDtypeStruct((2, C), jnp.float32),
        grid_spec=pltpu.PrefetchScalarGridSpec(
            num_scalar_prefetch=0,
            grid=(Rp // tr,),
            in_specs=[pl.BlockSpec((tr, C), lambda i: (i, 0))],
            out_specs=pl.BlockSpec((2, C), lambda i: (0, 0))),
        compiler_params=pltpu.CompilerParams(dimension_semantics=("arbitrary",)),
    )(xp)


def _scale_shift_kernel(x_ref, sc_ref, sh_ref, o_ref, *, relu):
    y = x_ref[...].astype(jnp.float32) * sc_ref[...] + sh_ref[...]
    if relu:
        y = jnp.maximum(y, 0.0)
    o_ref[...] = y.astype(o_ref.dtype)


def _scale_shift_res_kernel(x_ref, sc_ref, sh_ref, r_ref, o_ref, *, relu):
    y = x_ref[...].astype(jnp.float32) * sc_ref[...] + sh_ref[...]
    y = y + r_ref[...].astype(jnp.float32)
    if relu:
        y = jnp.maximum(y, 0.0)
    o_ref[...] = y.astype(o_ref.dtype)


def pallas_bn_apply(x2d, scale, shift, residual=None, relu=False,
                    out_dtype=jnp.bfloat16):
    R, C = x2d.shape
    tr = _row_tile(R, C)
    Rp = _round_up(R, tr)
    args = [_pad_axis(x2d, Rp, 0), scale.reshape(1, C), shift.reshape(1, C)]
    in_specs = [pl.BlockSpec((tr, C), lambda i: (i, 0)),
                pl.BlockSpec((1, C), lambda i: (0, 0)),
                pl.BlockSpec((1, C), lambda i: (0, 0))]
    if residual is not None:
        args.append(_pad_axis(residual, Rp, 0))
        in_specs.append(pl.BlockSpec((tr, C), lambda i: (i, 0)))
        kernel = functools.partial(_scale_shift_res_kernel, relu=relu)
    else:
        kernel = functools.partial(_scale_shift_kernel, relu=relu)
    out = pl.pallas_call(
        kernel,
        out_shape=jax.ShapeDtypeStruct((Rp, C), out_dtype),
        grid_spec=pltpu.PrefetchScalarGridSpec(
            num_scalar_prefetch=0,
            grid=(Rp // tr,),
            in_specs=in_specs,
            out_specs=pl.BlockSpec((tr, C), lambda i: (i, 0))),
        compiler_params=pltpu.CompilerParams(dimension_semantics=("parallel",)),
    )(*args)
    return out[:R] if Rp != R else out


def batchnorm(x_nhwc, bn, *, training, relu=False, residual=None, eps=1e-5):
    """Training: exact batch statistics; eval: running statistics.
    The affine transform, optional residual add and ReLU are one fused pass."""
    N, H, W, C = x_nhwc.shape
    R = N * H * W
    x2d = x_nhwc.reshape(R, C)
    if training:
        stats = pallas_bn_stats(x2d)
        mean = stats[0] / R
        var = stats[1] / R - mean * mean      # biased variance (PyTorch normalization)
        # TODO(synk): running_mean/var momentum updates are not part of the forward output.
    else:
        mean, var = bn["running_mean"], bn["running_var"]
    scale = bn["gamma"] * jax.lax.rsqrt(var + eps)
    shift = bn["beta"] - mean * scale
    res2d = None if residual is None else residual.reshape(R, C)
    y = pallas_bn_apply(x2d, scale, shift, residual=res2d, relu=relu)
    return y.reshape(N, H, W, C)


# ----------------------------------------------------------------------------
# pooling kernels
# ----------------------------------------------------------------------------

def _max_reduce_kernel(p_ref, o_ref):
    o_ref[...] = jnp.max(p_ref[...], axis=0)


def maxpool2d(x, k=3, stride=2, padding=1):
    N, H, W, C = x.shape
    Ho = (H + 2 * padding - k) // stride + 1
    Wo = (W + 2 * padding - k) // stride + 1
    xp = jnp.pad(x, ((0, 0), (padding, padding), (padding, padding), (0, 0)),
                 constant_values=-jnp.inf)
    pats = [xp[:, i::stride, j::stride, :][:, :Ho, :Wo, :].reshape(N * Ho * Wo, C)
            for i in range(k) for j in range(k)]
    p = jnp.stack(pats, axis=0)                              # (k*k, R, C)
    R = N * Ho * Wo
    tr = _row_tile(R, C)
    Rp = _round_up(R, tr)
    p = _pad_axis(p, Rp, 1)
    out = pl.pallas_call(
        _max_reduce_kernel,
        out_shape=jax.ShapeDtypeStruct((Rp, C), x.dtype),
        grid_spec=pltpu.PrefetchScalarGridSpec(
            num_scalar_prefetch=0,
            grid=(Rp // tr,),
            in_specs=[pl.BlockSpec((k * k, tr, C), lambda i: (0, i, 0))],
            out_specs=pl.BlockSpec((tr, C), lambda i: (i, 0))),
        compiler_params=pltpu.CompilerParams(dimension_semantics=("parallel",)),
    )(p)
    return out[:R].reshape(N, Ho, Wo, C)


def _mean_axis1_kernel(x_ref, o_ref):
    o_ref[...] = jnp.mean(x_ref[...].astype(jnp.float32), axis=1)


def avg_pool(x, kh=12, kw=4):
    """nn.AvgPool2d(kernel_size=(kh,kw)) with default stride=kernel (floor mode)."""
    N, H, W, C = x.shape
    Ho, Wo = H // kh, W // kw
    x = x[:, :Ho * kh, :Wo * kw, :]
    x = x.reshape(N, Ho, kh, Wo, kw, C).transpose(0, 1, 3, 2, 4, 5)
    x = x.reshape(N * Ho * Wo, kh * kw, C)
    out = pl.pallas_call(
        _mean_axis1_kernel,
        out_shape=jax.ShapeDtypeStruct((N * Ho * Wo, C), jnp.float32),
        grid_spec=pltpu.PrefetchScalarGridSpec(
            num_scalar_prefetch=0,
            grid=(N * Ho * Wo,),
            in_specs=[pl.BlockSpec((1, kh * kw, C), lambda i: (i, 0, 0))],
            out_specs=pl.BlockSpec((1, C), lambda i: (i, 0))),
        compiler_params=pltpu.CompilerParams(dimension_semantics=("parallel",)),
    )(x)
    return out.reshape(N, Ho, Wo, C)


# ----------------------------------------------------------------------------
# ResNet-50 structure (torchvision layout) and IDE forward
# ----------------------------------------------------------------------------

def bottleneck_block(x, p, training):
    stride = p["stride"]
    out = conv2d(x, p["conv1"], stride=1, padding=0)
    out = batchnorm(out, p["bn1"], training=training, relu=True)
    out = conv2d(out, p["conv2"], stride=stride, padding=1)
    out = batchnorm(out, p["bn2"], training=training, relu=True)
    out = conv2d(out, p["conv3"], stride=1, padding=0)
    if "down_conv" in p:
        residual = conv2d(x, p["down_conv"], stride=stride, padding=0)
        residual = batchnorm(residual, p["down_bn"], training=training, relu=False)
    else:
        residual = x
    # bn3 + residual add + ReLU fused into a single pass over the widest tensor
    return batchnorm(out, p["bn3"], training=training, relu=True, residual=residual)


def resnet50_forward(x_nhwc, p, training):
    x = conv2d(x_nhwc, p["conv1"], stride=2, padding=3)
    x = batchnorm(x, p["bn1"], training=training, relu=True)
    x = maxpool2d(x, k=3, stride=2, padding=1)
    for layer in p["layers"]:
        for blk in layer:
            x = bottleneck_block(x, blk, training)
    return x


def ide_forward(x_nchw, params, training=True):
    """Mirrors IDE.forward: backbone -> AvgPool2d((12,4)) -> squeeze."""
    x = jnp.transpose(x_nchw.astype(jnp.float32), (0, 2, 3, 1))   # NCHW -> NHWC
    fmap = resnet50_forward(x, params["backbone"], training)      # (N, H/32, W/32, 2048)
    pooled = avg_pool(fmap, 12, 4)
    feature = jnp.squeeze(pooled)                                 # == .squeeze()
    if training:
        return ([feature], [])
    return feature


# ----------------------------------------------------------------------------
# deterministic synthetic parameters (shapes follow torchvision resnet50)
# ----------------------------------------------------------------------------

def _conv_w(key, cout, cin, kh, kw):
    fan_in = cin * kh * kw
    std = (2.0 / fan_in) ** 0.5
    # Weights are stored pre-transposed to HWIO and pre-cast to bf16 (one-time prep;
    # a real PyTorch OIHW checkpoint would be permuted/cast the same way at load time).
    w = std * jax.random.normal(key, (kh, kw, cin, cout), jnp.float32)
    return w.astype(jnp.bfloat16)


def _bn(c):
    return {"gamma": jnp.ones((c,), jnp.float32),
            "beta": jnp.zeros((c,), jnp.float32),
            "running_mean": jnp.zeros((c,), jnp.float32),
            "running_var": jnp.ones((c,), jnp.float32)}


def make_resnet50_params(key):
    kit = iter(jax.random.split(key, 256))
    params = {"conv1": _conv_w(next(kit), 64, 3, 7, 7), "bn1": _bn(64)}
    layer_cfg = [(64, 3, 1), (128, 4, 2), (256, 6, 2), (512, 3, 2)]
    inplanes = 64
    layers = []
    for planes, n_blocks, stride in layer_cfg:
        blocks = []
        for b in range(n_blocks):
            s = stride if b == 0 else 1
            blk = {
                "stride": s,
                "conv1": _conv_w(next(kit), planes, inplanes, 1, 1), "bn1": _bn(planes),
                "conv2": _conv_w(next(kit), planes, planes, 3, 3),   "bn2": _bn(planes),
                "conv3": _conv_w(next(kit), planes * 4, planes, 1, 1), "bn3": _bn(planes * 4),
            }
            if s != 1 or inplanes != planes * 4:
                blk["down_conv"] = _conv_w(next(kit), planes * 4, inplanes, 1, 1)
                blk["down_bn"] = _bn(planes * 4)
            blocks.append(blk)
            inplanes = planes * 4
        layers.append(blocks)
    params["layers"] = layers
    return params


# ----------------------------------------------------------------------------
# demo
# ----------------------------------------------------------------------------

if __name__ == "__main__":
    key = jax.random.PRNGKey(0)
    k_params, k_x = jax.random.split(key)
    params = {"backbone": make_resnet50_params(k_params)}

    # IDE hard-codes AvgPool2d(kernel_size=(12,4)), which with the stride-32 ResNet-50
    # backbone implies the canonical ReID resolution 384x128 (feature map exactly 12x4).
    x = jax.random.normal(k_x, (2, 3, 384, 128), jnp.float32)     # NCHW, like PyTorch

    feats, softmax_losses = ide_forward(x, params, training=True)
    feature = jax.block_until_ready(feats[0])
    assert feature.shape == (2, 2048), feature.shape
    assert softmax_losses == []
    assert bool(jnp.all(jnp.isfinite(feature)))

    # eval branch returns just the pooled feature
    eval_feature = jax.block_until_ready(ide_forward(x, params, training=False))
    assert eval_feature.shape == (2, 2048), eval_feature.shape
    assert bool(jnp.all(jnp.isfinite(eval_feature)))

    print("KERNEL_OK")
</pallas_src>

<mosaic_0001>
module attributes {stable_mosaic.version = 11 : i64} {
  func.func @_matmul_kernel(%arg0: i32, %arg1: i32, %arg2: i32, %arg3: memref<256x256xbf16, #tpu.memory_space<vmem>>, %arg4: memref<256x128xbf16, #tpu.memory_space<vmem>>, %arg5: memref<256x128xf32, #tpu.memory_space<vmem>>) attributes {dimension_semantics = [#tpu.dimension_semantics<parallel>, #tpu.dimension_semantics<parallel>, #tpu.dimension_semantics<arbitrary>], iteration_bounds = array<i64: 96, 1, 1>, scalar_prefetch = 0 : i64, scratch_operands = 0 : i64, tpu.core_type = #tpu.core_type<tc>, window_params = [{transform_indices = @transform_0, window_bounds = array<i64: 256, 256>}, {transform_indices = @transform_1, window_bounds = array<i64: 256, 128>}, {transform_indices = @transform_2, window_bounds = array<i64: 256, 128>}]} {
    %c0_i32 = arith.constant 0 : i32
    %0 = arith.cmpi eq, %arg2, %c0_i32 : i32
    %1 = arith.extui %0 : i1 to i32
    %c0_i32_0 = arith.constant 0 : i32
    %2 = arith.cmpi ne, %1, %c0_i32_0 : i32
    scf.if %2 {
      %cst_8 = arith.constant 0.000000e+00 : f32
      %9 = vector.broadcast %cst_8 : f32 to vector<256x128xf32>
      %c0_9 = arith.constant 0 : index
      %c0_10 = arith.constant 0 : index
      %10 = vector.load %arg5[%c0_9, %c0_10] : memref<256x128xf32, #tpu.memory_space<vmem>>, vector<256x128xf32>
      tpu.vector_store %arg5[%c0_9, %c0_10], %9 {strides = array<i32>} : memref<256x128xf32, #tpu.memory_space<vmem>>, vector<256x128xf32>,
    } else {
    }
    %c0 = arith.constant 0 : index
    %c0_1 = arith.constant 0 : index
    %3 = vector.load %arg5[%c0, %c0_1] : memref<256x128xf32, #tpu.memory_space<vmem>>, vector<256x128xf32>
    %c0_2 = arith.constant 0 : index
    %c0_3 = arith.constant 0 : index
    %4 = vector.load %arg3[%c0_2, %c0_3] : memref<256x256xbf16, #tpu.memory_space<vmem>>, vector<256x256xbf16>
    %c0_4 = arith.constant 0 : index
    %c0_5 = arith.constant 0 : index
    %5 = vector.load %arg4[%c0_4, %c0_5] : memref<256x128xbf16, #tpu.memory_space<vmem>>, vector<256x128xbf16>
    %cst = arith.constant dense<0.000000e+00> : vector<256x128xf32>
    %6 = tpu.matmul %4, %5, %cst {dimension_numbers = #tpu.dot_dimension_numbers<[1], [0], [0], [1], [0, 0, 1, 1], [], []>} : vector<256x256xbf16>, vector<256x128xbf16>, vector<256x128xf32> -> vector<256x128xf32>
    %7 = arith.addf %3, %6 : vector<256x128xf32>
    %c0_6 = arith.constant 0 : index
    %c0_7 = arith.constant 0 : index
    %8 = vector.load %arg5[%c0_6, %c0_7] : memref<256x128xf32, #tpu.memory_space<vmem>>, vector<256x128xf32>
    tpu.vector_store %arg5[%c0_6, %c0_7], %7 {strides = array<i32>} : memref<256x128xf32, #tpu.memory_space<vmem>>, vector<256x128xf32>,
    return
  }
  func.func @transform_0(%arg0: i32, %arg1: i32, %arg2: i32) -> (i32, i32) {
    %c0_i32 = arith.constant 0 : i32
    return %arg0, %arg2 : i32, i32
  }
  func.func @transform_1(%arg0: i32, %arg1: i32, %arg2: i32) -> (i32, i32) {
    %c0_i32 = arith.constant 0 : i32
    return %arg2, %arg1 : i32, i32
  }
  func.func @transform_2(%arg0: i32, %arg1: i32, %arg2: i32) -> (i32, i32) {
    %c0_i32 = arith.constant 0 : i32
    return %arg0, %arg1 : i32, i32
  }
}

</mosaic_0001>

<bundles_post_ra>
// kernel: tpu_custom_call.1
= control target key start
LH: loop header
LB: loop body
LE: loop exit
PB: predicated region body
PF: predicated region fallthrough
CT: control target
= control target key end

     0   :  { %7 = vsyncpa [#allocation3], 0  ;;  %s1751_s0 = inlined_call_operand.hbm [shape: bf16[24576,256], index: 0, kind: input, shape index: {}]   ;;  %s1752_s1 = inlined_call_operand.hbm [shape: bf16[256,128], index: 1, kind: input, shape index: {}]   ;;  %s1753_s2 = inlined_call_operand.hbm [shape: f32[24576,128], index: 2, kind: output, shape index: {}]  }
   0x1   :  { %9 = vsyncpa [#allocation3 + $0x1], 0 }
   0x2   :  { %10 = vsyncpa [#allocation6], 0 }
   0x3   :  { %11 = vsyncpa [#allocation4], 0 }
   0x4   :  { %13 = vsyncpa [#allocation4 + $0x1], 0  ;;  %s1461_s9 = smov 0   ;;  %s1463_s10 = smov 0  }
   0x5   :  { %s1465_s11 = smov 0   ;;  %s1467_s12 = smov 0  }
   0x6   :  { %s1469_s13 = smov 0   ;;  %s1471_s14 = smov 0  }
   0x7 LB: > { %s950_s15 = sadd.s32 4294967295, %s1435_s14   ;;  %s951_s16 = sadd.s32 4294967294, %s1435_s14   ;;  %s1435_s14 = sphi %s1471_s14, %s19_s14   ;;  %s1431_s13 = sphi %s1469_s13, %s1776_s13   ;;  %s1427_s12 = sphi %s1467_s12, %s1775_s12   ;;  %s1423_s11 = sphi %s1465_s11, %s1774_s11   ;;  %s1419_s10 = sphi %s1463_s10, %s1773_s10   ;;  %s1415_s9 = sphi %s1461_s9, %s1772_s9  }
   0x8   : > { %p60_p0 = scmp.ne.s32.totalorder %s1419_s10, %s1415_s9  ;;  %p1495_p1 = scmp.eq.s32.totalorder %s950_s15, 0 }
   0x9   : > { %p1499_p2 = scmp.eq.s32.totalorder %s950_s15, 95  ;;  %p120_p3 = scmp.eq.s32.totalorder %s951_s16, 95 }
   0xa   : > { %s1758_s17 = scalar_select %p1495_p1, 1, 0 }
   0xb   : > { %s1759_s18 = scalar_select %p1499_p2, 1, 0 }
   0xc   : > { %p1505_p4 = por %p1495_p1, %p60_p0  ;;  %p952_p5 = scmp.ge.s32.totalorder %s1435_s14, 1 }
   0xd   : > { %p1510_p6 = por %p120_p3, %p60_p0  ;;  %p127_p7 = scmp.lt.s32.totalorder %s1435_s14, 97 }
   0xe   : > { %s1760_s19 = scalar_select %p1505_p4, 1, 0 }
   0xf   : > { %s1761_s20 = scalar_select %p1510_p6, 1, 0 }
  0x10   : > { %p1515_p8 = pnand %p952_p5, %p127_p7  ;;  %s1437_s22 = smov [#allocation5]  }
  0x11   : > { %s143_s23 = sshll.u32 %s1437_s22, 4  ;;  %s38_s25 = sadd.s32 1, %s1431_s13  ;;  %s144_s23 = int_to_ptr.vmem [resolvable:$true] %s143_s23 }
  0x12   : > { %s1762_s21 = scalar_select %p1515_p8, 1, 0 }
  0x13   : > { %p1155_p9 = pneg %p1515_p8  ;;  %s1291_s28 = scalar_lea.hbm %s1752_s1, 2048 }
  0x14   : > { %p1292_p11 = scmp.ne.s32.totalorder %s1752_s1, %s1291_s28  ;;  %p1298_p3 = scmp.lt.u32.totalorder %s1291_s28, %s1752_s1 }
  0x15   : > { %p1523_p10 = pnand %p1155_p9, %p1495_p1 }
  0x17   : > { %p1293_p12 = pneg %p1523_p10 }
  0x19   : > { %p1294_p13 = pnand %p1293_p12, %p1292_p11 }
  0x1b   : > { %p1295_p0 = pneg %p1294_p13 }
  0x1d   : > { %p1300_p5 = pnand %p1298_p3, %p1295_p0 }
  0x1f   : > { %1303 = shalt.err (!%p1300_p5)
}
  0x20   : > { %s1304_s5 = scalar_lea.vmem %s144_s23, 2048  ;;  %p1312_p1 = scmp.lt.s32.totalorder %s144_s23, %s144_s23 }
  0x21   : > { %p1305_p7 = scmp.ne.s32.totalorder %s144_s23, %s1304_s5  ;;  %p1313_p4 = scmp.lt.s32.totalorder %s1304_s5, %s1304_s5 }
  0x23   : > { %p1307_p9 = pnand %p1305_p7, %p1293_p12  ;;  %p1314_p8 = por %p1313_p4, %p1312_p1 }
  0x25   : > { %p1308_p6 = pneg %p1307_p9 }
  0x27   : > { %p1315_p2 = pnand %p1314_p8, %p1308_p6 }
  0x29   : > { %1318 = shalt.err (!%p1315_p2)
}
  0x2a   : > { %s1438_s6 = smov 64   ;;  %s1439_s7 = smov 4  }
  0x2b   : > { %1158 = dma.hbm_to_vmem [thread:$0]  (!%p1523_p10), %s1752_s1, 2048, %s144_s23, [#allocation6], %s1438_s6, %s1438_s6, %s1439_s7  }
  0x2c   : > { %p40_p1 = scmp.ge.s32.totalorder %s38_s25, 96  ;;  %s47_s16 = sadd.s32 1, %s1423_s11 }
  0x2d   : > { %p54_p2 = scmp.ne.s32.totalorder %s1423_s11, %s1419_s10  ;;  %p55_p4 = scmp.eq.s32.totalorder %s1435_s14, 0 }
  0x2e   : > { %s1778_s25 = smov (%p40_p1, %s38_s25), 0  ;;  %p1765_p8 = scmp.ne.s32.totalorder %s1759_s18, 0 }
  0x2f   : > { %p1550_p6 = por %p55_p4, %p54_p2  ;;  %s42_s24 = ssub.s32 %s1431_s13, %s1778_s25 }
  0x30   : > { %p1556_p11 = por %p1765_p8, %p54_p2  ;;  %p1168_p12 = scmp.lt.s32.totalorder %s1435_s14, 96 }
  0x31   : > { %p45_p10 = scmp.eq.s32.totalorder %s42_s24, 0  ;;  %s157_s23 = sand.u32 1, %s1423_s11  }
  0x32   : > { %s955_s27 = sshll.u32 %s157_s23, 8  ;;  %s1017_s29 = sshll.u32 %s1431_s13, 12 }
  0x33   : > { %s1565_s28 = scalar_select %p45_p10, %s1423_s11, %s47_s16  }
  0x34   : > { %s1571_s4 = scalar_lea.hbm %s1751_s0, %s1017_s29  ;;  %s161_s18 = scalar_lea.vmem [#allocation2], %s955_s27 }
  0x35   : > { %s171_s5 = sshll.u32 %s161_s18, 4  ;;  %p1577_p13 = pnand %p1168_p12, %p1550_p6  ;;  %s1573_s5 = int_to_ptr.vmem [resolvable:$true] %s171_s5 }
  0x36   : > { %s1581_s7 = scalar_lea.sflag [#allocation3], %s157_s23  ;;  %s1319_s8 = scalar_lea.hbm %s1571_s4, 4096 }
  0x37   : > { %p1320_p0 = scmp.ne.s32.totalorder %s1571_s4, %s1319_s8  ;;  %p1321_p3 = pneg %p1577_p13 }
  0x38   : > { %s1324_s22 = scalar_lea.hbm %s1751_s0, 393216  ;;  %p1325_p9 = scmp.lt.u32.totalorder %s1571_s4, %s1751_s0 }
  0x39   : > { %p1322_p5 = pnand %p1321_p3, %p1320_p0  ;;  %p1326_p1 = scmp.lt.u32.totalorder %s1324_s22, %s1319_s8 }
  0x3a   : > { %p1328_p4 = scmp.lt.u32.totalorder %s1319_s8, %s1571_s4 }
  0x3b   : > { %p1323_p7 = pneg %p1322_p5  ;;  %p1327_p2 = por %p1326_p1, %p1325_p9 }
  0x3d   : > { %p1329_p6 = por %p1328_p4, %p1327_p2 }
  0x3f   : > { %p1330_p8 = pnand %p1329_p6, %p1323_p7 }
  0x41   : > { %1333 = shalt.err (!%p1330_p8)
}
  0x42   : > { %s1334_s23 = scalar_lea.vmem %s1573_s5, 4096  ;;  %s1440_s29 = smov [#allocation2]  }
  0x43   : > { %p1335_p12 = scmp.ne.s32.totalorder %s1573_s5, %s1334_s23  ;;  %s1339_s30 = sshll.u32 %s1440_s29, 4  ;;  %s1340_s30 = int_to_ptr.vmem [resolvable:$false] %s1339_s30 }
  0x44   : > { %s1341_s3 = scalar_lea.vmem %s1340_s30, 8192  ;;  %p1342_p5 = scmp.lt.s32.totalorder %s1573_s5, %s1340_s30 }
  0x45   : > { %p1337_p10 = pnand %p1335_p12, %p1321_p3  ;;  %p1343_p9 = scmp.lt.s32.totalorder %s1341_s3, %s1334_s23 }
  0x47   : > { %p1338_p0 = pneg %p1337_p10  ;;  %p1344_p1 = por %p1343_p9, %p1342_p5 }
  0x49   : > { %p1345_p2 = pnand %p1344_p1, %p1338_p0 }
  0x4b   : > { %1348 = shalt.err (!%p1345_p2)
}
  0x4c   : > { %s1441_s18 = smov 128   ;;  %s1442_s8 = smov 8  }
  0x4d   : > { %1162 = dma.hbm_to_vmem [thread:$0]  (!%p1577_p13), %s1571_s4, 4096, %s1573_s5, %s1581_s7, %s1441_s18, %s1441_s18, %s1442_s8  }
  0x4e   : > { %p1768_p3 = scmp.ne.s32.totalorder %s1762_s21, 0 }
  0x4f   : > { %s1612_s15 = sand.u32 (!%p1768_p3), 1, %s1419_s10   ;;  %p1769_p7 = scmp.ne.s32.totalorder (!%p1768_p3), %s1760_s19, 0 }
  0x50   : > { %183 = sbr.rel (%p1768_p3) target bundleno = 412 (0x19c), region = 28  ;;  %s960_s16 = sshll.u32 (!%p1768_p3), %s1612_s15, 8 }
  0x51   : > { %s186_s22 = scalar_lea.sflag (!%p1768_p3), [#allocation3], %s1612_s15  ;;  %s1618_s24 = scalar_lea.vmem (!%p1768_p3), [#allocation2], %s960_s16 }
  0x57   : > { %1402 = dma.done.wait (%p1769_p7), %s186_s22, 4096  }
  0x58   : > { %1404 = vsyncadd (%p1769_p7), %s186_s22, 4294963200  ;;  %p1770_p13 = scmp.ne.s32.totalorder %s1758_s17, 0 }
  0x5a   : > { %1406 = dma.done.wait (%p1770_p13), [#allocation6], 2048  }
  0x5b   : > { %1408 = vsyncadd (%p1770_p13), [#allocation6], 4294965248  ;;  %v1227_v0 = vld [vmem:[#allocation5 + $0x40] sm:$0xff]   ;;  %v1229_v2 = vld [vmem:[#allocation5 + $0x48] sm:$0xff]   ;;  %s1662_s17 = scalar_lea.vmem [#allocation7], %s960_s16  ;;  %s1018_s19 = sshll.u32 %s1427_s12, 12 }
  0x5c   : > { %v1228_v1 = vld [vmem:[#allocation5] sm:$0xff]   ;;  %1019 = vmatprep.subr.bf16.mxu0 %v1227_v0  ;;  %1131 = vmatprep.subr.bf16.mxu1 %v1227_v0  ;;  %v1230_v3 = vld [vmem:[#allocation5 + $0x8] sm:$0xff]   ;;  %v1231_v4 = vld [vmem:[#allocation5 + $0x50] sm:$0xff]   ;;  %s847_s21 = sshll.u32 %s1662_s17, 4  ;;  %s1697_s6 = scalar_lea.hbm %s1753_s2, %s1018_s19  ;;  %s1699_s21 = int_to_ptr.vmem [resolvable:$true] %s847_s21 }
  0x5d   : > { %1020 = vmatpush3.bf16.msra.mxu0 %v1228_v1  ;;  %1139 = vmatpush3.bf16.msra.mxu1 %v1228_v1  ;;  %v1232_v5 = vld [vmem:[#allocation5 + $0x10] sm:$0xff]   ;;  %v1233_v6 = vld [vmem:[#allocation5 + $0x58] sm:$0xff]   ;;  %v1235_v8 = vld [vmem:[#allocation5 + $0x60] sm:$0xff]   ;;  %s833_s12 = scalar_lea.sflag [#allocation4], %s1612_s15  ;;  %s1349_s7 = scalar_lea.vmem %s1699_s21, 4096 }
  0x5e   : > { %1021 = vmatprep.subr.bf16.mxu0 %v1229_v2  ;;  %1132 = vmatprep.subr.bf16.mxu1 %v1229_v2  ;;  %v1234_v7 = vld [vmem:[#allocation5 + $0x18] sm:$0xff]   ;;  %v1236_v9 = vld [vmem:[#allocation5 + $0x20] sm:$0xff]   ;;  %v1237_v10 = vld [vmem:[#allocation5 + $0x68] sm:$0xff]   ;;  %p1350_p4 = scmp.ne.s32.totalorder %s1699_s21, %s1349_s7  ;;  %s1443_s27 = smov [#allocation7]  }
  0x5f   : > { %v1245_v11 = vld [vmem:[%s1618_s24 + $0x4] ss:$8 sps:$4 sm:$0xff]   ;;  %v1239_v14 = vld [vmem:[#allocation5 + $0x70] sm:$0xff]   ;;  %v1241_v16 = vld [vmem:[#allocation5 + $0x78] sm:$0xff]   ;;  %s1353_s23 = sshll.u32 %s1443_s27, 4  ;;  %s1354_s23 = int_to_ptr.vmem [resolvable:$false] %s1353_s23 }
  0x60   : > { %v1248_v12 = vld [vmem:[%s1618_s24 + $0x84] ss:$8 sps:$4 sm:$0xff]   ;;  %639 = vmatprep.mubr.bf16.mxu0 %v1245_v11  ;;  %v1240_v15 = vld [vmem:[#allocation5 + $0x30] sm:$0xff]   ;;  %v1242_v17 = vld [vmem:[#allocation5 + $0x38] sm:$0xff]   ;;  %p1351_p6 = pnand %p1350_p4, %p1556_p11  ;;  %s1355_s29 = scalar_lea.vmem %s1354_s23, 8192 }
  0x61   : > { %1022 = vmatpush3.bf16.msra.mxu0 %v1230_v3  ;;  %1140 = vmatpush3.bf16.msra.mxu1 %v1230_v3  ;;  %v1238_v13 = vld [vmem:[#allocation5 + $0x28] sm:$0xff]   ;;  %v1249_v20 = vld [vmem:[%s1618_s24 + $0x14] ss:$8 sps:$4 sm:$0xff]   ;;  %v1253_v22 = vld [vmem:[%s1618_s24 + $0x10] ss:$8 sps:$4 sm:$0xff]   ;;  %p1356_p12 = scmp.lt.s32.totalorder %s1699_s21, %s1354_s23  ;;  %p1357_p10 = scmp.lt.s32.totalorder %s1355_s29, %s1349_s7 }
  0x62   : > { %1023 = vmatprep.subr.bf16.mxu0 %v1231_v4  ;;  %1133 = vmatprep.subr.bf16.mxu1 %v1231_v4  ;;  %v1243_v18 = vld [vmem:[%s1618_s24] ss:$8 sps:$4 sm:$0xff]   ;;  %v1251_v21 = vld [vmem:[%s1618_s24 + $0x94] ss:$8 sps:$4 sm:$0xff]   ;;  %v1254_v23 = vld [vmem:[%s1618_s24 + $0x90] ss:$8 sps:$4 sm:$0xff]   ;;  %p1352_p8 = pneg %p1351_p6 }
  0x63   : > { %703 = vmatprep.mubr.bf16.mxu1 %v1248_v12  ;;  %v1246_v19 = vld [vmem:[%s1618_s24 + $0x80] ss:$8 sps:$4 sm:$0xff]   ;;  %v1255_v24 = vld [vmem:[%s1618_s24 + $0x24] ss:$8 sps:$4 sm:$0xff]   ;;  %v1261_v28 = vld [vmem:[%s1618_s24 + $0x34] ss:$8 sps:$4 sm:$0xff]   ;;  %p1358_p0 = por %p1357_p10, %p1356_p12 }
  0x64   : > { %v1257_v25 = vld [vmem:[%s1618_s24 + $0xa4] ss:$8 sps:$4 sm:$0xff]   ;;  %v1259_v26 = vld [vmem:[%s1618_s24 + $0x20] ss:$8 sps:$4 sm:$0xff]   ;;  %v1263_v29 = vld [vmem:[%s1618_s24 + $0xb4] ss:$8 sps:$4 sm:$0xff]  }
  0x65   : > { %1024 = vmatpush3.bf16.msra.mxu0 %v1232_v5  ;;  %1141 = vmatpush3.bf16.msra.mxu1 %v1232_v5  ;;  %v1260_v27 = vld [vmem:[%s1618_s24 + $0xa0] ss:$8 sps:$4 sm:$0xff]   ;;  %v1265_v30 = vld [vmem:[%s1618_s24 + $0x30] ss:$8 sps:$4 sm:$0xff]   ;;  %v1267_v32 = vld [vmem:[%s1618_s24 + $0x44] ss:$8 sps:$4 sm:$0xff]   ;;  %p1359_p5 = pnand %p1358_p0, %p1352_p8 }
  0x66   : > { %1025 = vmatprep.subr.bf16.mxu0 %v1233_v6  ;;  %1134 = vmatprep.subr.bf16.mxu1 %v1233_v6  ;;  %v1266_v31 = vld [vmem:[%s1618_s24 + $0xb0] ss:$8 sps:$4 sm:$0xff]   ;;  %v1269_v33 = vld [vmem:[%s1618_s24 + $0xc4] ss:$8 sps:$4 sm:$0xff]   ;;  %v1271_v34 = vld [vmem:[%s1618_s24 + $0x40] ss:$8 sps:$4 sm:$0xff]  }
  0x67   : > { %v1272_v35 = vld [vmem:[%s1618_s24 + $0xc0] ss:$8 sps:$4 sm:$0xff]   ;;  %v1273_v36 = vld [vmem:[%s1618_s24 + $0x54] ss:$8 sps:$4 sm:$0xff]   ;;  %v1277_v38 = vld [vmem:[%s1618_s24 + $0x50] ss:$8 sps:$4 sm:$0xff]  }
  0x68   : > { %v1275_v37 = vld [vmem:[%s1618_s24 + $0xd4] ss:$8 sps:$4 sm:$0xff]   ;;  %v1278_v39 = vld [vmem:[%s1618_s24 + $0xd0] ss:$8 sps:$4 sm:$0xff]   ;;  %v1279_v40 = vld [vmem:[%s1618_s24 + $0x64] ss:$8 sps:$4 sm:$0xff]  }
  0x69   : > { %1026 = vmatpush3.bf16.msra.mxu0 %v1234_v7  ;;  %1142 = vmatpush3.bf16.msra.mxu1 %v1234_v7  ;;  %v1281_v41 = vld [vmem:[%s1618_s24 + $0xe4] ss:$8 sps:$4 sm:$0xff]   ;;  %v1283_v42 = vld [vmem:[%s1618_s24 + $0x60] ss:$8 sps:$4 sm:$0xff]   ;;  %v1285_v44 = vld [vmem:[%s1618_s24 + $0x74] ss:$8 sps:$4 sm:$0xff]  }
  0x6a   : > { %1027 = vmatprep.subr.bf16.mxu0 %v1235_v8  ;;  %1135 = vmatprep.subr.bf16.mxu1 %v1235_v8  ;;  %v1284_v43 = vld [vmem:[%s1618_s24 + $0xe0] ss:$8 sps:$4 sm:$0xff]   ;;  %v1287_v45 = vld [vmem:[%s1618_s24 + $0xf4] ss:$8 sps:$4 sm:$0xff]   ;;  %v1289_v46 = vld [vmem:[%s1618_s24 + $0x70] ss:$8 sps:$4 sm:$0xff]  }
  0x6b   : > { %v1290_v47 = vld [vmem:[%s1618_s24 + $0xf0] ss:$8 sps:$4 sm:$0xff]  }
  0x6d   : > { %1028 = vmatpush3.bf16.msra.mxu0 %v1236_v9  ;;  %1143 = vmatpush3.bf16.msra.mxu1 %v1236_v9 }
  0x6e   : > { %1029 = vmatprep.subr.bf16.mxu0 %v1237_v10  ;;  %1136 = vmatprep.subr.bf16.mxu1 %v1237_v10 }
  0x71   : > { %1030 = vmatpush3.bf16.msra.mxu0 %v1238_v13  ;;  %1144 = vmatpush3.bf16.msra.mxu1 %v1238_v13 }
  0x72   : > { %1031 = vmatprep.subr.bf16.mxu0 %v1239_v14  ;;  %1137 = vmatprep.subr.bf16.mxu1 %v1239_v14 }
  0x75   : > { %1032 = vmatpush3.bf16.msra.mxu0 %v1240_v15  ;;  %1145 = vmatpush3.bf16.msra.mxu1 %v1240_v15 }
  0x76   : > { %1033 = vmatprep.subr.bf16.mxu0 %v1241_v16  ;;  %1138 = vmatprep.subr.bf16.mxu1 %v1241_v16 }
  0x79   : > { %1034 = vmatpush3.bf16.msra.mxu0 %v1242_v17  ;;  %1146 = vmatpush3.bf16.msra.mxu1 %v1242_v17 }
  0x7c   : > { %640 = vmatmul.mubr.bf16.vlgmr.msra.gmra.mrb[0].mxu0 %v1243_v18  ;;  %704 = vmatmul.mubr.bf16.vlgmr.msra.gmra.mrb[0].mxu1 %v1246_v19 }
  0x7d   : > { %647 = vmatprep.mubr.bf16.mxu0 %v1249_v20  ;;  %711 = vmatprep.mubr.bf16.mxu1 %v1251_v21 }
  0x84   : > { %648 = vmatmul.mubr.bf16.gmra.mrb[4].mxu0 %v1253_v22  ;;  %712 = vmatmul.mubr.bf16.gmra.mrb[4].mxu1 %v1254_v23 }
  0x85   : > { %655 = vmatprep.mubr.bf16.mxu0 %v1255_v24  ;;  %719 = vmatprep.mubr.bf16.mxu1 %v1257_v25 }
  0x8c   : > { %656 = vmatmul.mubr.bf16.gmra.mrb[8].mxu0 %v1259_v26  ;;  %720 = vmatmul.mubr.bf16.gmra.mrb[8].mxu1 %v1260_v27 }
  0x8d   : > { %663 = vmatprep.mubr.bf16.mxu0 %v1261_v28  ;;  %727 = vmatprep.mubr.bf16.mxu1 %v1263_v29 }
  0x94   : > { %664 = vmatmul.mubr.bf16.gmra.mrb[12].mxu0 %v1265_v30  ;;  %728 = vmatmul.mubr.bf16.gmra.mrb[12].mxu1 %v1266_v31 }
  0x95   : > { %671 = vmatprep.mubr.bf16.mxu0 %v1267_v32  ;;  %735 = vmatprep.mubr.bf16.mxu1 %v1269_v33 }
  0x9c   : > { %672 = vmatmul.mubr.bf16.gmra.mrb[16].mxu0 %v1271_v34  ;;  %736 = vmatmul.mubr.bf16.gmra.mrb[16].mxu1 %v1272_v35 }
  0x9d   : > { %679 = vmatprep.mubr.bf16.mxu0 %v1273_v36  ;;  %743 = vmatprep.mubr.bf16.mxu1 %v1275_v37 }
  0xa4   : > { %680 = vmatmul.mubr.bf16.gmra.mrb[20].mxu0 %v1277_v38  ;;  %744 = vmatmul.mubr.bf16.gmra.mrb[20].mxu1 %v1278_v39 }
  0xa5   : > { %687 = vmatprep.mubr.bf16.mxu0 %v1279_v40  ;;  %751 = vmatprep.mubr.bf16.mxu1 %v1281_v41 }
  0xac   : > { %688 = vmatmul.mubr.bf16.gmra.mrb[24].mxu0 %v1283_v42  ;;  %752 = vmatmul.mubr.bf16.gmra.mrb[24].mxu1 %v1284_v43 }
  0xad   : > { %695 = vmatprep.mubr.bf16.mxu0 %v1285_v44  ;;  %759 = vmatprep.mubr.bf16.mxu1 %v1287_v45 }
  0xb4   : > { %696 = vmatmul.mubr.bf16.gmra.mrb[28].mxu0 %v1289_v46  ;;  %760 = vmatmul.mubr.bf16.gmra.mrb[28].mxu1 %v1290_v47 }
 0x14f   : > { %v1035_v48 = vpop.f32.mrb[0].mxu0  ;;  %v1083_v49 = vpop.f32.mrb[0].mxu1 }
 0x150   : > { %v1036_v50 = vpop.f32.mrb[1].mxu0  ;;  %v1084_v51 = vpop.f32.mrb[1].mxu1 }
 0x151   : > { %v1037_v52 = vadd.f32 %v1036_v50, %v1035_v48  ;;  %v1085_v53 = vadd.f32 %v1084_v51, %v1083_v49  ;;  %v1038_v54 = vpop.f32.mrb[2].mxu0  ;;  %v1086_v55 = vpop.f32.mrb[2].mxu1 }
 0x152   : > { %v1039_v56 = vpop.f32.mrb[3].mxu0  ;;  %v1087_v57 = vpop.f32.mrb[3].mxu1 }
 0x153   : > { %v1040_v58 = vadd.f32 %v1039_v56, %v1038_v54  ;;  %v1088_v59 = vadd.f32 %v1087_v57, %v1086_v55  ;;  %800 = vst [vmem:[%s1662_s17] sm:$0xff] %v1037_v52  ;;  %816 = vst [vmem:[%s1662_s17 + $0x80] sm:$0xff] %v1085_v53 }
 0x155   : > { %801 = vst [vmem:[%s1662_s17 + $0x8] sm:$0xff] %v1040_v58  ;;  %817 = vst [vmem:[%s1662_s17 + $0x88] sm:$0xff] %v1088_v59 }
 0x157   : > { %v1041_v60 = vpop.f32.mrb[4].mxu0  ;;  %v1089_v61 = vpop.f32.mrb[4].mxu1 }
 0x158   : > { %v1042_v62 = vpop.f32.mrb[5].mxu0  ;;  %v1090_v63 = vpop.f32.mrb[5].mxu1 }
 0x159   : > { %v1043_v0 = vadd.f32 %v1042_v62, %v1041_v60  ;;  %v1091_v1 = vadd.f32 %v1090_v63, %v1089_v61  ;;  %v1044_v2 = vpop.f32.mrb[6].mxu0  ;;  %v1092_v3 = vpop.f32.mrb[6].mxu1 }
 0x15a   : > { %v1045_v4 = vpop.f32.mrb[7].mxu0  ;;  %v1093_v5 = vpop.f32.mrb[7].mxu1 }
 0x15b   : > { %v1046_v6 = vadd.f32 %v1045_v4, %v1044_v2  ;;  %v1094_v7 = vadd.f32 %v1093_v5, %v1092_v3  ;;  %802 = vst [vmem:[%s1662_s17 + $0x10] sm:$0xff] %v1043_v0  ;;  %818 = vst [vmem:[%s1662_s17 + $0x90] sm:$0xff] %v1091_v1 }
 0x15d   : > { %803 = vst [vmem:[%s1662_s17 + $0x18] sm:$0xff] %v1046_v6  ;;  %819 = vst [vmem:[%s1662_s17 + $0x98] sm:$0xff] %v1094_v7 }
 0x15f   : > { %v1047_v8 = vpop.f32.mrb[8].mxu0  ;;  %v1095_v9 = vpop.f32.mrb[8].mxu1 }
 0x160   : > { %v1048_v10 = vpop.f32.mrb[9].mxu0  ;;  %v1096_v11 = vpop.f32.mrb[9].mxu1 }
 0x161   : > { %v1049_v12 = vadd.f32 %v1048_v10, %v1047_v8  ;;  %v1097_v13 = vadd.f32 %v1096_v11, %v1095_v9  ;;  %v1050_v14 = vpop.f32.mrb[10].mxu0  ;;  %v1098_v15 = vpop.f32.mrb[10].mxu1 }
 0x162   : > { %v1051_v16 = vpop.f32.mrb[11].mxu0  ;;  %v1099_v17 = vpop.f32.mrb[11].mxu1 }
 0x163   : > { %v1052_v18 = vadd.f32 %v1051_v16, %v1050_v14  ;;  %v1100_v19 = vadd.f32 %v1099_v17, %v1098_v15  ;;  %804 = vst [vmem:[%s1662_s17 + $0x20] sm:$0xff] %v1049_v12  ;;  %820 = vst [vmem:[%s1662_s17 + $0xa0] sm:$0xff] %v1097_v13 }
 0x165   : > { %805 = vst [vmem:[%s1662_s17 + $0x28] sm:$0xff] %v1052_v18  ;;  %821 = vst [vmem:[%s1662_s17 + $0xa8] sm:$0xff] %v1100_v19 }
 0x167   : > { %v1053_v20 = vpop.f32.mrb[12].mxu0  ;;  %v1101_v21 = vpop.f32.mrb[12].mxu1 }
 0x168   : > { %v1054_v22 = vpop.f32.mrb[13].mxu0  ;;  %v1102_v23 = vpop.f32.mrb[13].mxu1 }
 0x169   : > { %v1055_v24 = vadd.f32 %v1054_v22, %v1053_v20  ;;  %v1103_v25 = vadd.f32 %v1102_v23, %v1101_v21  ;;  %v1056_v26 = vpop.f32.mrb[14].mxu0  ;;  %v1104_v27 = vpop.f32.mrb[14].mxu1 }
 0x16a   : > { %v1057_v28 = vpop.f32.mrb[15].mxu0  ;;  %v1105_v29 = vpop.f32.mrb[15].mxu1 }
 0x16b   : > { %v1058_v30 = vadd.f32 %v1057_v28, %v1056_v26  ;;  %v1106_v31 = vadd.f32 %v1105_v29, %v1104_v27  ;;  %806 = vst [vmem:[%s1662_s17 + $0x30] sm:$0xff] %v1055_v24  ;;  %822 = vst [vmem:[%s1662_s17 + $0xb0] sm:$0xff] %v1103_v25 }
 0x16d   : > { %807 = vst [vmem:[%s1662_s17 + $0x38] sm:$0xff] %v1058_v30  ;;  %823 = vst [vmem:[%s1662_s17 + $0xb8] sm:$0xff] %v1106_v31 }
 0x16f   : > { %v1059_v32 = vpop.f32.mrb[16].mxu0  ;;  %v1107_v33 = vpop.f32.mrb[16].mxu1 }
 0x170   : > { %v1060_v34 = vpop.f32.mrb[17].mxu0  ;;  %v1108_v35 = vpop.f32.mrb[17].mxu1 }
 0x171   : > { %v1061_v36 = vadd.f32 %v1060_v34, %v1059_v32  ;;  %v1109_v37 = vadd.f32 %v1108_v35, %v1107_v33  ;;  %v1062_v38 = vpop.f32.mrb[18].mxu0  ;;  %v1110_v39 = vpop.f32.mrb[18].mxu1 }
 0x172   : > { %v1063_v40 = vpop.f32.mrb[19].mxu0  ;;  %v1111_v41 = vpop.f32.mrb[19].mxu1 }
 0x173   : > { %v1064_v42 = vadd.f32 %v1063_v40, %v1062_v38  ;;  %v1112_v43 = vadd.f32 %v1111_v41, %v1110_v39  ;;  %808 = vst [vmem:[%s1662_s17 + $0x40] sm:$0xff] %v1061_v36  ;;  %824 = vst [vmem:[%s1662_s17 + $0xc0] sm:$0xff] %v1109_v37 }
 0x175   : > { %809 = vst [vmem:[%s1662_s17 + $0x48] sm:$0xff] %v1064_v42  ;;  %825 = vst [vmem:[%s1662_s17 + $0xc8] sm:$0xff] %v1112_v43 }
 0x177   : > { %v1065_v44 = vpop.f32.mrb[20].mxu0  ;;  %v1113_v45 = vpop.f32.mrb[20].mxu1 }
 0x178   : > { %v1066_v46 = vpop.f32.mrb[21].mxu0  ;;  %v1114_v47 = vpop.f32.mrb[21].mxu1 }
 0x179   : > { %v1067_v48 = vadd.f32 %v1066_v46, %v1065_v44  ;;  %v1115_v49 = vadd.f32 %v1114_v47, %v1113_v45  ;;  %v1068_v50 = vpop.f32.mrb[22].mxu0  ;;  %v1116_v51 = vpop.f32.mrb[22].mxu1 }
 0x17a   : > { %v1069_v52 = vpop.f32.mrb[23].mxu0  ;;  %v1117_v53 = vpop.f32.mrb[23].mxu1 }
 0x17b   : > { %v1070_v54 = vadd.f32 %v1069_v52, %v1068_v50  ;;  %v1118_v55 = vadd.f32 %v1117_v53, %v1116_v51  ;;  %810 = vst [vmem:[%s1662_s17 + $0x50] sm:$0xff] %v1067_v48  ;;  %826 = vst [vmem:[%s1662_s17 + $0xd0] sm:$0xff] %v1115_v49 }
 0x17d   : > { %811 = vst [vmem:[%s1662_s17 + $0x58] sm:$0xff] %v1070_v54  ;;  %827 = vst [vmem:[%s1662_s17 + $0xd8] sm:$0xff] %v1118_v55 }
 0x17f   : > { %v1071_v56 = vpop.f32.mrb[24].mxu0  ;;  %v1119_v57 = vpop.f32.mrb[24].mxu1 }
 0x180   : > { %v1072_v58 = vpop.f32.mrb[25].mxu0  ;;  %v1120_v59 = vpop.f32.mrb[25].mxu1 }
 0x181   : > { %v1073_v60 = vadd.f32 %v1072_v58, %v1071_v56  ;;  %v1121_v61 = vadd.f32 %v1120_v59, %v1119_v57  ;;  %v1074_v62 = vpop.f32.mrb[26].mxu0  ;;  %v1122_v63 = vpop.f32.mrb[26].mxu1 }
 0x182   : > { %v1075_v0 = vpop.f32.mrb[27].mxu0  ;;  %v1123_v1 = vpop.f32.mrb[27].mxu1 }
 0x183   : > { %v1076_v2 = vadd.f32 %v1075_v0, %v1074_v62  ;;  %v1124_v3 = vadd.f32 %v1123_v1, %v1122_v63  ;;  %812 = vst [vmem:[%s1662_s17 + $0x60] sm:$0xff] %v1073_v60  ;;  %828 = vst [vmem:[%s1662_s17 + $0xe0] sm:$0xff] %v1121_v61 }
 0x185   : > { %813 = vst [vmem:[%s1662_s17 + $0x68] sm:$0xff] %v1076_v2  ;;  %829 = vst [vmem:[%s1662_s17 + $0xe8] sm:$0xff] %v1124_v3 }
 0x187   : > { %v1077_v4 = vpop.f32.mrb[28].mxu0  ;;  %v1125_v5 = vpop.f32.mrb[28].mxu1 }
 0x188   : > { %v1078_v6 = vpop.f32.mrb[29].mxu0  ;;  %v1126_v7 = vpop.f32.mrb[29].mxu1 }
 0x189   : > { %v1079_v8 = vadd.f32 %v1078_v6, %v1077_v4  ;;  %v1127_v9 = vadd.f32 %v1126_v7, %v1125_v5  ;;  %v1080_v10 = vpop.f32.mrb[30].mxu0  ;;  %v1128_v11 = vpop.f32.mrb[30].mxu1 }
 0x18a   : > { %v1081_v12 = vpop.f32.mrb[31].mxu0  ;;  %v1129_v13 = vpop.f32.mrb[31].mxu1 }
 0x18b   : > { %v1082_v14 = vadd.f32 %v1081_v12, %v1080_v10  ;;  %v1130_v15 = vadd.f32 %v1129_v13, %v1128_v11  ;;  %814 = vst [vmem:[%s1662_s17 + $0x70] sm:$0xff] %v1079_v8  ;;  %830 = vst [vmem:[%s1662_s17 + $0xf0] sm:$0xff] %v1127_v9 }
 0x18d   : > { %815 = vst [vmem:[%s1662_s17 + $0x78] sm:$0xff] %v1082_v14  ;;  %831 = vst [vmem:[%s1662_s17 + $0xf8] sm:$0xff] %v1130_v15 }
 0x18e   : > { %1362 = shalt.err (!%p1359_p5)
}
 0x18f   : > { %s1363_s30 = scalar_lea.hbm %s1697_s6, 4096  ;;  %s1367_s8 = scalar_lea.hbm %s1753_s2, 393216 }
 0x190   : > { %p1364_p9 = scmp.ne.s32.totalorder %s1697_s6, %s1363_s30  ;;  %p1368_p3 = scmp.lt.u32.totalorder %s1697_s6, %s1753_s2 }
 0x191   : > { %p1369_p7 = scmp.lt.u32.totalorder %s1367_s8, %s1363_s30  ;;  %p1371_p4 = scmp.lt.u32.totalorder %s1363_s30, %s1697_s6 }
 0x192   : > { %p1365_p1 = pnand %p1364_p9, %p1556_p11 }
 0x193   : > { %p1370_p13 = por %p1369_p7, %p1368_p3 }
 0x194   : > { %p1366_p2 = pneg %p1365_p1 }
 0x195   : > { %p1372_p6 = por %p1371_p4, %p1370_p13 }
 0x197   : > { %p1373_p8 = pnand %p1372_p6, %p1366_p2 }
 0x199   : > { %1376 = shalt.err (!%p1373_p8)
}
 0x19a   : > { %s1444_s24 = smov 128   ;;  %s1445_s17 = smov 8  }
 0x19b   : > { %1153 = dma.vmem_to_hbm [thread:$0]  (%p1556_p11), %s1699_s21, 4096, %s1697_s6, %s833_s12, %s1444_s24, %s1444_s24, %s1445_s17  }
 0x19c PF: > { %p1170_p12 = scmp.ge.s32.totalorder %s1435_s14, 2  ;;  %s862_s19 = sand.u32 1, %s1415_s9  }
 0x19d   : > { %p1771_p10 = scmp.ne.s32.totalorder %s1761_s20, 0  ;;  %s863_s4 = scalar_lea.sflag [#allocation4], %s862_s19 }
 0x19f   : > { %p1164_p0 = pnand %p1170_p12, %p1771_p10 }
 0x1a1   : > { %1410 = dma.done.wait (!%p1164_p0), %s863_s4, 4096  }
 0x1a2   : > { %1412 = vsyncadd (!%p1164_p0), %s863_s4, 4294963200  ;;  %s19_s14 = sadd.s32 1, %s1435_s14   ;;  %s1772_s9 = smov %s1419_s10 }
 0x1a3   : > { %p16_p5 = scmp.ge.s32.totalorder %s19_s14, 98   ;;  %s1773_s10 = smov %s1423_s11 }
 0x1a4   : > { %s1774_s11 = smov %s1565_s28  ;;  %s1775_s12 = smov %s1431_s13 }
 0x1a5   : > { %s1776_s13 = smov %s1778_s25  ;;  %18 = sbr.rel (!%p16_p5) target bundleno = 7 (0x7), region = 82 }
 0x1ac   :  { %868 = vsyncpa [#allocation3], 1 }
 0x1ad   :  { %870 = vsyncpa [#allocation3 + $0x1], 1 }
 0x1ae   :  { %871 = vsyncpa [#allocation6], 1 }
 0x1af   :  { %872 = vsyncpa [#allocation4], 1 }
 0x1b0   :  { %874 = vsyncpa [#allocation4 + $0x1], 1 }

</bundles_post_ra>
